<compile_context>
chip_gen: v6e
topology: v6e:2x2x1
jax: 0.10.0
libtpu: 0.0.40
codegen_flags: <defaults>
</compile_context>

<pallas_src>
import numpy as np
import jax
import jax.numpy as jnp
from jax.experimental import pallas as pl
from jax.experimental.pallas import tpu as pltpu


# ----------------------------- VMEM budgeting --------------------------------
def _vmem_capacity_bytes():
    try:
        return int(pltpu.get_tpu_info().vmem_capacity_bytes)
    except Exception:
        return 128 << 20          # v5e/v6e physical VMEM; safe fallback


def _vmem_budget_bytes():
    # Spend about half of physical VMEM on the pipelined input tiles:
    # ~64 MiB on v5e/v6e (128 MiB VMEM), ~32 MiB on v7x (64 MiB VMEM).
    return _vmem_capacity_bytes() // 2


# ------------------------------ Pallas kernel ---------------------------------
def _make_concat_kernel(lane_offsets, lane_widths, row_tile, num_full, tail):
    """Kernel: DMA each input VMEM tile into its lane range of the HBM output.

    The output is never staged in VMEM.  All offsets/widths are compile-time
    constants; the per-step row offset is dynamic (pl.ds).  The last (possibly
    partial) grid step copies `tail` rows via a separate static-size DMA.
    """
    num_inputs = len(lane_widths)

    def kernel(*args):
        in_refs = args[:num_inputs]
        out_ref = args[num_inputs]          # full output ref, resident in HBM
        sem = args[num_inputs + 1]          # one DMA semaphore per input
        r = pl.program_id(0)
        row_start = pl.multiple_of(r * row_tile, row_tile)

        def copy_rows(nrows):
            copies = []
            for i, in_ref in enumerate(in_refs):
                off, n = lane_offsets[i], lane_widths[i]
                src = in_ref if nrows == row_tile else in_ref.at[pl.ds(0, nrows), :]
                cp = pltpu.make_async_copy(
                    src,
                    out_ref.at[pl.ds(row_start, nrows), pl.ds(off, n)],
                    sem.at[i])
                cp.start()
                copies.append(cp)
            for cp in copies:                 # all input->output DMAs overlap
                cp.wait()

        if tail == 0:
            copy_rows(row_tile)
        else:
            @pl.when(r < num_full)
            def _():
                copy_rows(row_tile)

            @pl.when(r == num_full)
            def _():
                copy_rows(tail)

    return kernel


# --------------------------------- Wrapper -------------------------------------
def concat(xs, dimension=1, *, max_row_tile=None):
    """torch.cat(xs, dim=dimension) equivalent, driven by a Pallas TPU kernel."""
    xs = [jnp.asarray(x) for x in xs]
    assert len(xs) >= 1, "concat needs at least one input"
    ndim = xs[0].ndim
    d = dimension if dimension >= 0 else dimension + ndim
    assert 0 <= d < ndim
    dtype = jnp.result_type(*xs)
    xs = [x.astype(dtype) for x in xs]

    # All non-concat dims must agree (same contract as torch.cat).
    for x in xs[1:]:
        assert x.ndim == ndim
        assert x.shape[:d] == xs[0].shape[:d]
        assert x.shape[d + 1:] == xs[0].shape[d + 1:]

    out_shape_full = (xs[0].shape[:d]
                      + (sum(int(x.shape[d]) for x in xs),)
                      + xs[0].shape[d + 1:])

    # Degenerate empty output: no kernel needed.
    if 0 in out_shape_full:
        return jnp.zeros(out_shape_full, dtype)

    # Zero-width inputs along `d` contribute nothing; drop before building specs.
    xs = [x for x in xs if x.shape[d] > 0]
    if len(xs) == 1:
        return xs[0].reshape(out_shape_full)

    outer = int(np.prod(out_shape_full[:d], dtype=np.int64)) if d > 0 else 1
    inner = int(np.prod(out_shape_full[d + 1:], dtype=np.int64)) if d < ndim - 1 else 1
    widths = [int(x.shape[d]) * inner for x in xs]       # per-input lane width
    offsets = [int(o) for o in np.cumsum([0] + widths[:-1])]
    total = int(sum(widths))

    # Lane-dense flatten: (outer, C_i * inner); concat offsets are multiples of
    # `inner` (alignment only affects DMA efficiency now, never vst masking).
    xs2 = [x.reshape(outer, n) for x, n in zip(xs, widths)]

    itemsize = np.dtype(dtype).itemsize
    row_gran = max(8, 32 // itemsize)        # 8 rows f32 / 16 bf16 / 32 int8-fp8

    budget = _vmem_budget_bytes()
    bytes_per_row = 2 * total * itemsize     # double-buffered inputs; no output tile
    max_rows = max(row_gran, (budget // bytes_per_row) // row_gran * row_gran)

    target = min(max_rows, outer)
    if max_row_tile is not None:
        target = min(target, int(max_row_tile))
    if outer >= 2 * row_gran:
        # Keep >= 2 grid steps so the "parallel" axis feeds both v7x TensorCores.
        target = min(target, -(-outer // 2))
    row_tile = min(outer, max(row_gran, (target // row_gran) * row_gran))
    # If even the granular tile overflows the budget (huge `inner`, tiny batch),
    # shrink below the packing granule — costs layout efficiency, never correctness.
    while row_tile > 1 and row_tile * bytes_per_row > budget:
        row_tile = max(1, row_tile // 2)
    # TODO(synk): for outer<=2 with multi-hundred-MiB rows, add a second grid axis
    # over `inner` (3-D blocks) instead of shrinking row_tile toward 1.

    grid = (pl.cdiv(outer, row_tile),)
    num_full = outer // row_tile
    tail = outer % row_tile

    kernel = _make_concat_kernel(offsets, widths, row_tile, num_full, tail)

    in_specs = [pl.BlockSpec((row_tile, n), lambda r: (r, 0)) for n in widths]
    out_spec = pl.BlockSpec(memory_space=pl.ANY)   # output never staged in VMEM

    capacity = _vmem_capacity_bytes()
    vmem_usage = row_tile * bytes_per_row + (1 << 20)   # + headroom for scratch
    vmem_limit = int(min(capacity, max(budget, vmem_usage)))

    # Pure data movement: read everything once, write once.
    cost = pl.CostEstimate(flops=0, transcendentals=0,
                           bytes_accessed=2 * outer * total * itemsize)

    out2 = pl.pallas_call(
        kernel,
        out_shape=jax.ShapeDtypeStruct((outer, total), dtype),
        grid=grid,
        in_specs=in_specs,
        out_specs=out_spec,
        scratch_shapes=[pltpu.SemaphoreType.DMA((len(xs2),))],
        compiler_params=pltpu.CompilerParams(
            dimension_semantics=("parallel",),
            vmem_limit_bytes=vmem_limit),
        cost_estimate=cost,
    )(*xs2)

    return out2.reshape(out_shape_full)


# ----------------------------------- Main --------------------------------------
if __name__ == "__main__":
    key = jax.random.PRNGKey(0)
    ks = jax.random.split(key, 8)

    # 1) Typical YOLO-style use: channel concat (dim=1), f32.
    a = jax.random.normal(ks[0], (2, 4, 16, 16), jnp.float32)
    b = jax.random.normal(ks[1], (2, 8, 16, 16), jnp.float32)
    c = jax.random.normal(ks[2], (2, 16, 16, 16), jnp.float32)
    out = jax.block_until_ready(concat([a, b, c], dimension=1))
    ref = jnp.concatenate([a, b, c], axis=1)
    np.testing.assert_array_equal(np.asarray(out), np.asarray(ref))

    # 2) Multi-step grid + ragged tail (outer=20 -> row_tile=8, grid=3, tail=4).
    d0 = jax.random.normal(ks[3], (20, 4, 8, 16), jnp.float32)
    d1 = jax.random.normal(ks[4], (20, 6, 8, 16), jnp.float32)
    out = jax.block_until_ready(concat([d0, d1], dimension=1))
    ref = jnp.concatenate([d0, d1], axis=1)
    np.testing.assert_array_equal(np.asarray(out), np.asarray(ref))

    # 3) bf16, concat along the last dim (un-128-aligned lane offsets, DMA path,
    #    dtype-aware 16-row granule, grid=2 with an 8-row tail).
    e0 = jax.random.normal(ks[5], (2, 3, 4, 16), jnp.bfloat16)
    e1 = jax.random.normal(ks[6], (2, 3, 4, 48), jnp.bfloat16)
    out = jax.block_until_ready(concat([e0, e1], dimension=-1))
    ref = jnp.concatenate([e0, e1], axis=-1)
    np.testing.assert_array_equal(np.asarray(out), np.asarray(ref))

    # 4) dim=0 concat (outer == 1 flatten path).
    f0 = jax.random.normal(ks[7], (3, 4, 8), jnp.float32)
    f1 = jax.random.normal(ks[0], (5, 4, 8), jnp.float32)
    out = jax.block_until_ready(concat([f0, f1], dimension=0))
    ref = jnp.concatenate([f0, f1], axis=0)
    np.testing.assert_array_equal(np.asarray(out), np.asarray(ref))

    print("KERNEL_OK")
</pallas_src>

<mosaic_0001>
module attributes {stable_mosaic.version = 11 : i64} {
  func.func @kernel(%arg0: i32, %arg1: memref<2x1024xf32, #tpu.memory_space<vmem>>, %arg2: memref<2x2048xf32, #tpu.memory_space<vmem>>, %arg3: memref<2x4096xf32, #tpu.memory_space<vmem>>, %arg4: memref<2x7168xf32, #tpu.memory_space<any>>, %arg5: memref<3x!tpu.dma_semaphore, #tpu.memory_space<semaphore_mem>>) attributes {dimension_semantics = [#tpu.dimension_semantics<parallel>], iteration_bounds = array<i64: 1>, scalar_prefetch = 0 : i64, scratch_operands = 1 : i64, tpu.core_type = #tpu.core_type<tc>, window_params = [{transform_indices = @transform_0, window_bounds = array<i64: 2, 1024>}, {transform_indices = @transform_1, window_bounds = array<i64: 2, 2048>}, {transform_indices = @transform_2, window_bounds = array<i64: 2, 4096>}, {}]} {
    %c2_i32 = arith.constant 2 : i32
    %0 = arith.muli %arg0, %c2_i32 : i32
    %1 = tpu.assume_multiple %0, 2 : i32
    %c0_i32 = arith.constant 0 : i32
    %c0_i32_0 = arith.constant 0 : i32
    %2 = tpu.memref_slice %arg4[%1, %c0_i32_0] : memref<2x7168xf32, #tpu.memory_space<any>> -> memref<2x1024xf32, #tpu.memory_space<any>>
    %3 = tpu.memref_slice %arg5[%c0_i32] : memref<3x!tpu.dma_semaphore, #tpu.memory_space<semaphore_mem>> -> memref<1x!tpu.dma_semaphore, #tpu.memory_space<semaphore_mem>>
    %4 = tpu.memref_squeeze %3 : memref<1x!tpu.dma_semaphore, #tpu.memory_space<semaphore_mem>> -> memref<!tpu.dma_semaphore, #tpu.memory_space<semaphore_mem>>
    tpu.enqueue_dma source(%arg1 : memref<2x1024xf32, #tpu.memory_space<vmem>>) target(%2 : memref<2x1024xf32, #tpu.memory_space<any>>) target_semaphore(%4 : memref<!tpu.dma_semaphore, #tpu.memory_space<semaphore_mem>>)
    %c1_i32 = arith.constant 1 : i32
    %c1024_i32 = arith.constant 1024 : i32
    %5 = tpu.memref_slice %arg4[%1, %c1024_i32] : memref<2x7168xf32, #tpu.memory_space<any>> -> memref<2x2048xf32, #tpu.memory_space<any>>
    %6 = tpu.memref_slice %arg5[%c1_i32] : memref<3x!tpu.dma_semaphore, #tpu.memory_space<semaphore_mem>> -> memref<1x!tpu.dma_semaphore, #tpu.memory_space<semaphore_mem>>
    %7 = tpu.memref_squeeze %6 : memref<1x!tpu.dma_semaphore, #tpu.memory_space<semaphore_mem>> -> memref<!tpu.dma_semaphore, #tpu.memory_space<semaphore_mem>>
    tpu.enqueue_dma source(%arg2 : memref<2x2048xf32, #tpu.memory_space<vmem>>) target(%5 : memref<2x2048xf32, #tpu.memory_space<any>>) target_semaphore(%7 : memref<!tpu.dma_semaphore, #tpu.memory_space<semaphore_mem>>)
    %c2_i32_1 = arith.constant 2 : i32
    %c3072_i32 = arith.constant 3072 : i32
    %8 = tpu.memref_slice %arg4[%1, %c3072_i32] : memref<2x7168xf32, #tpu.memory_space<any>> -> memref<2x4096xf32, #tpu.memory_space<any>>
    %9 = tpu.memref_slice %arg5[%c2_i32_1] : memref<3x!tpu.dma_semaphore, #tpu.memory_space<semaphore_mem>> -> memref<1x!tpu.dma_semaphore, #tpu.memory_space<semaphore_mem>>
    %10 = tpu.memref_squeeze %9 : memref<1x!tpu.dma_semaphore, #tpu.memory_space<semaphore_mem>> -> memref<!tpu.dma_semaphore, #tpu.memory_space<semaphore_mem>>
    tpu.enqueue_dma source(%arg3 : memref<2x4096xf32, #tpu.memory_space<vmem>>) target(%8 : memref<2x4096xf32, #tpu.memory_space<any>>) target_semaphore(%10 : memref<!tpu.dma_semaphore, #tpu.memory_space<semaphore_mem>>)
    %c0_i32_2 = arith.constant 0 : i32
    %c0_i32_3 = arith.constant 0 : i32
    %11 = tpu.memref_slice %arg4[%1, %c0_i32_3] : memref<2x7168xf32, #tpu.memory_space<any>> -> memref<2x1024xf32, #tpu.memory_space<any>>
    %12 = tpu.memref_slice %arg5[%c0_i32_2] : memref<3x!tpu.dma_semaphore, #tpu.memory_space<semaphore_mem>> -> memref<1x!tpu.dma_semaphore, #tpu.memory_space<semaphore_mem>>
    %13 = tpu.memref_squeeze %12 : memref<1x!tpu.dma_semaphore, #tpu.memory_space<semaphore_mem>> -> memref<!tpu.dma_semaphore, #tpu.memory_space<semaphore_mem>>
    tpu.wait_dma2 semaphore(%13 : memref<!tpu.dma_semaphore, #tpu.memory_space<semaphore_mem>>) src(%arg1 : memref<2x1024xf32, #tpu.memory_space<vmem>>) dst(%11 : memref<2x1024xf32, #tpu.memory_space<any>>)
    %c1_i32_4 = arith.constant 1 : i32
    %c1024_i32_5 = arith.constant 1024 : i32
    %14 = tpu.memref_slice %arg4[%1, %c1024_i32_5] : memref<2x7168xf32, #tpu.memory_space<any>> -> memref<2x2048xf32, #tpu.memory_space<any>>
    %15 = tpu.memref_slice %arg5[%c1_i32_4] : memref<3x!tpu.dma_semaphore, #tpu.memory_space<semaphore_mem>> -> memref<1x!tpu.dma_semaphore, #tpu.memory_space<semaphore_mem>>
    %16 = tpu.memref_squeeze %15 : memref<1x!tpu.dma_semaphore, #tpu.memory_space<semaphore_mem>> -> memref<!tpu.dma_semaphore, #tpu.memory_space<semaphore_mem>>
    tpu.wait_dma2 semaphore(%16 : memref<!tpu.dma_semaphore, #tpu.memory_space<semaphore_mem>>) src(%arg2 : memref<2x2048xf32, #tpu.memory_space<vmem>>) dst(%14 : memref<2x2048xf32, #tpu.memory_space<any>>)
    %c2_i32_6 = arith.constant 2 : i32
    %c3072_i32_7 = arith.constant 3072 : i32
    %17 = tpu.memref_slice %arg4[%1, %c3072_i32_7] : memref<2x7168xf32, #tpu.memory_space<any>> -> memref<2x4096xf32, #tpu.memory_space<any>>
    %18 = tpu.memref_slice %arg5[%c2_i32_6] : memref<3x!tpu.dma_semaphore, #tpu.memory_space<semaphore_mem>> -> memref<1x!tpu.dma_semaphore, #tpu.memory_space<semaphore_mem>>
    %19 = tpu.memref_squeeze %18 : memref<1x!tpu.dma_semaphore, #tpu.memory_space<semaphore_mem>> -> memref<!tpu.dma_semaphore, #tpu.memory_space<semaphore_mem>>
    tpu.wait_dma2 semaphore(%19 : memref<!tpu.dma_semaphore, #tpu.memory_space<semaphore_mem>>) src(%arg3 : memref<2x4096xf32, #tpu.memory_space<vmem>>) dst(%17 : memref<2x4096xf32, #tpu.memory_space<any>>)
    return
  }
  func.func @transform_0(%arg0: i32) -> (i32, i32) {
    %c0_i32 = arith.constant 0 : i32
    %c0_i32_0 = arith.constant 0 : i32
    return %arg0, %c0_i32 : i32, i32
  }
  func.func @transform_1(%arg0: i32) -> (i32, i32) {
    %c0_i32 = arith.constant 0 : i32
    %c0_i32_0 = arith.constant 0 : i32
    return %arg0, %c0_i32 : i32, i32
  }
  func.func @transform_2(%arg0: i32) -> (i32, i32) {
    %c0_i32 = arith.constant 0 : i32
    %c0_i32_0 = arith.constant 0 : i32
    return %arg0, %c0_i32 : i32, i32
  }
}

</mosaic_0001>

<bundles_post_ra>
// kernel: tpu_custom_call.1
= control target key start
LH: loop header
LB: loop body
LE: loop exit
PB: predicated region body
PF: predicated region fallthrough
CT: control target
= control target key end

     0   :  { %8 = vsyncpa [#allocation4], 0  ;;  %s353_s0 = inlined_call_operand.hbm [shape: f32[2,1024], index: 0, kind: input, shape index: {}]   ;;  %s354_s1 = inlined_call_operand.hbm [shape: f32[2,2048], index: 1, kind: input, shape index: {}]   ;;  %s355_s2 = inlined_call_operand.hbm [shape: f32[2,4096], index: 2, kind: input, shape index: {}]   ;;  %s356_s3 = inlined_call_operand.hbm [shape: f32[2,7168], index: 3, kind: output, shape index: {}]  }
   0x1   :  { %9 = vsyncpa [#allocation6], 0  ;;  %s280_s12 = smov [#allocation5]   ;;  %s281_s14 = smov [#allocation3]  }
   0x2   :  { %s26_s13 = sshll.u32 %s280_s12, 4  ;;  %s16_s15 = sshll.u32 %s281_s14, 4  ;;  %s303_s13 = int_to_ptr.vmem [resolvable:$true] %s26_s13  ;;  %s305_s15 = int_to_ptr.vmem [resolvable:$true] %s16_s15 }
   0x3   :  { %s152_s16 = scalar_lea.vmem %s303_s13, 512  ;;  %p157_p1 = scmp.lt.s32.totalorder %s303_s13, %s303_s13 }
   0x4   :  { %p153_p0 = scmp.ne.s32.totalorder %s303_s13, %s152_s16  ;;  %p158_p2 = scmp.lt.s32.totalorder %s152_s16, %s152_s16 }
   0x6   :  { %p159_p3 = por %p158_p2, %p157_p1 }
   0x8   :  { %p311_p4 = pnand %p159_p3, %p153_p0 }
   0xa   :  { %163 = shalt.err (!%p311_p4)
}
   0xb   :  { %29 = dma.hbm_to_vmem [thread:$0]  %s354_s1, 512, %s303_s13, [#allocation6]  }
   0xc   :  { %s172_s20 = scalar_lea.vmem %s305_s15, 256  ;;  %p177_p6 = scmp.lt.s32.totalorder %s305_s15, %s305_s15 }
   0xd   :  { %p173_p5 = scmp.ne.s32.totalorder %s305_s15, %s172_s20  ;;  %p178_p7 = scmp.lt.s32.totalorder %s172_s20, %s172_s20 }
   0xf   :  { %p179_p8 = por %p178_p7, %p177_p6 }
  0x11   :  { %p325_p9 = pnand %p179_p8, %p173_p5 }
  0x13   :  { %183 = shalt.err (!%p325_p9)
}
  0x14   :  { %19 = dma.hbm_to_vmem [thread:$0]  %s353_s0, 256, %s305_s15, [#allocation4]  }
  0x15   :  { %s282_s24 = smov [#allocation7]  }
  0x16   :  { %s36_s1 = sshll.u32 %s282_s24, 4  ;;  %s37_s1 = int_to_ptr.vmem [resolvable:$true] %s36_s1 }
  0x17   :  { %s192_s25 = scalar_lea.vmem %s37_s1, 1024  ;;  %p197_p11 = scmp.lt.s32.totalorder %s37_s1, %s37_s1 }
  0x18   :  { %p193_p10 = scmp.ne.s32.totalorder %s37_s1, %s192_s25  ;;  %p198_p12 = scmp.lt.s32.totalorder %s192_s25, %s192_s25 }
  0x1a   :  { %p199_p13 = por %p198_p12, %p197_p11 }
  0x1c   :  { %p200_p0 = pnand %p199_p13, %p193_p10 }
  0x1e   :  { %203 = shalt.err (!%p200_p0)
}
  0x1f   :  { %39 = dma.hbm_to_vmem [thread:$0]  %s355_s2, 1024, %s37_s1, [#allocation6]  }
  0x20   :  { %270 = dma.done.wait [#allocation4], 256  }
  0x21   :  { %271 = vsyncadd [#allocation4], 4294967040 }
  0x22   :  { %272 = dma.done.wait [#allocation6], 1536  }
  0x23   :  { %273 = vsyncadd [#allocation6], 4294965760  ;;  %s133_s29 = scalar_lea.hbm %s356_s3, 256  ;;  %s137_s5 = scalar_lea.hbm %s356_s3, 768 }
  0x24   :  { %215 = shalt.err (!%p325_p9)  }
  0x25   :  { %65 = dma.vmem_to_hbm [thread:$0]  %s305_s15, 256, %s356_s3, [#allocation2] }
  0x26   :  { %235 = shalt.err (!%p311_p4)  }
  0x27   :  { %80 = dma.vmem_to_hbm [thread:$0]  %s303_s13, 512, %s133_s29, [#allocation2 + $0x1] }
  0x28   :  { %258 = shalt.err (!%p200_p0)  }
  0x29   :  { %95 = dma.vmem_to_hbm [thread:$0]  %s37_s1, 1024, %s137_s5, [#allocation2 + $0x2] }
  0x2a   :  { %274 = dma.done.wait [#allocation2], 256 }
  0x2b   :  { %275 = vsyncadd [#allocation2], 4294967040 }
  0x2c   :  { %276 = dma.done.wait [#allocation2 + $0x1], 512 }
  0x2d   :  { %277 = vsyncadd [#allocation2 + $0x1], 4294966784 }
  0x2e   :  { %278 = dma.done.wait [#allocation2 + $0x2], 1024 }
  0x2f   :  { %279 = vsyncadd [#allocation2 + $0x2], 4294966272 }
  0x30   :  { %106 = vsyncpa [#allocation4], 1 }
  0x31   :  { %107 = vsyncpa [#allocation6], 1 }
  0x32   :  { %108 = vsyncmov [#allocation2] }
  0x35   :  { %s109_s2 = vpop.sfrf %108 }
  0x36   :  { %p138_p1 = scmp.ne.s32.totalorder %s109_s2, 0 }
  0x38   :  { %113 = shalt.err (%p138_p1)  }
  0x39   :  { %115 = vsyncmov [#allocation2 + $0x1] }
  0x3c   :  { %s116_s3 = vpop.sfrf %115 }
  0x3d   :  { %p139_p2 = scmp.ne.s32.totalorder %s116_s3, 0 }
  0x3f   :  { %120 = shalt.err (%p139_p2)  }
  0x40   :  { %122 = vsyncmov [#allocation2 + $0x2] }
  0x43   :  { %s123_s8 = vpop.sfrf %122 }
  0x44   :  { %p140_p3 = scmp.ne.s32.totalorder %s123_s8, 0 }
  0x46   :  { %127 = shalt.err (%p140_p3)  }

</bundles_post_ra>
